<compile_context>
chip_gen: v6e
topology: v6e:2x2x1
jax: 0.10.0
libtpu: 0.0.40
codegen_flags: <defaults>
</compile_context>

<pallas_src>
import functools

import jax
import jax.numpy as jnp
from jax.experimental import pallas as pl
from jax.experimental.pallas import tpu as pltpu


def _round_up(x, m):
    return (x + m - 1) // m * m


def _choose_batch_tile(batch):
    """bf16-packed batch tile; >=2 tiles when possible, capped at 512 rows."""
    if batch <= 16:
        return 16
    half = _round_up((batch + 1) // 2, 16)
    return min(512, half)


def _vmem_capacity_bytes():
    try:
        return int(pltpu.get_tpu_info().vmem_capacity_bytes)
    except Exception:
        return 64 * 1024 * 1024  # conservative: v7x per-TensorCore VMEM


def _resident_vmem_bytes(bt, din, dlat, dout, nh):
    w = (din * dlat + nh * dlat * dlat + dlat * dout) * 2
    aux = ((1 + nh) * 8 * dlat + 8 * dout) * 4
    x = bt * din * 2
    o = bt * dout * 4
    h = bt * dlat * 2
    return 2 * (w + aux + x + o) + h          # inputs/outputs double-buffered


def _streamed_vmem_bytes(bt, din, dlat, dout, nbuf):
    w_res = (din * dlat + dlat * dout) * 2
    w_stream = nbuf * dlat * dlat * 2
    aux = 2 * (8 * dlat + 8 * dout) * 4 + nbuf * 8 * dlat * 4
    x = bt * din * 2
    o = bt * dout * 4
    h = bt * dlat * 2
    return 2 * (w_res + aux + x + o) + w_stream + h


# ---------------------------------------------------------------------------
# Kernel A (primary): all weights VMEM-resident, grid = (batch_tiles,)
# ---------------------------------------------------------------------------
def _mlp_resident_kernel(x_ref, wf_ref, auxf_ref, wh_ref, auxh_ref,
                         wl_ref, bl_ref, o_ref, h_ref, *, n_hidden):
    """Whole network applied to one batch tile.

    x_ref    : (bt, Din)        bf16  padded input tile
    wf_ref   : (Din, Dlat)      bf16  first-layer weight (resident)
    auxf_ref : (8, Dlat)        f32   row0 bias, row1 BN scale, row2 BN shift
    wh_ref   : (nh, Dlat, Dlat) bf16  hidden-layer weight stack (resident)
    auxh_ref : (nh, 8, Dlat)    f32
    wl_ref   : (Dlat, Dout)     bf16  final-layer weight (resident)
    bl_ref   : (8, Dout)        f32   row0 = final bias
    o_ref    : (bt, Dout)       f32   logits slab
    h_ref    : (bt, Dlat)       bf16  persistent activation scratch
    """
    # Layer 0: Linear -> ReLU -> folded eval-mode BatchNorm (Dropout = id).
    y = jnp.dot(x_ref[...], wf_ref[...], preferred_element_type=jnp.float32)
    h_ref[...] = (jnp.maximum(y + auxf_ref[0:1, :], 0.0) * auxf_ref[1:2, :]
                  + auxf_ref[2:3, :]).astype(jnp.bfloat16)

    # Hidden layers 1 .. n_layers-1: weights stay resident, zero HBM traffic.
    def layer(k, carry):
        yk = jnp.dot(h_ref[...], wh_ref[k], preferred_element_type=jnp.float32)
        aux = auxh_ref[k]
        h_ref[...] = (jnp.maximum(yk + aux[0:1, :], 0.0) * aux[1:2, :]
                      + aux[2:3, :]).astype(jnp.bfloat16)
        return carry

    jax.lax.fori_loop(0, n_hidden, layer, 0)

    # Final Linear: bias only, lane-dense logits write.
    o_ref[...] = (jnp.dot(h_ref[...], wl_ref[...],
                          preferred_element_type=jnp.float32) + bl_ref[0:1, :])


# ---------------------------------------------------------------------------
# Kernel B (fallback): hidden weights streamed, grid = (batch_tiles, n_hidden)
# ---------------------------------------------------------------------------
def _mlp_streamed_kernel(x_ref, wf_ref, auxf_ref, wh_ref, auxh_ref,
                         wl_ref, bl_ref, o_ref, h_ref):
    k = pl.program_id(1)
    last = pl.num_programs(1) - 1

    # First layer on the first hidden step of every batch tile.
    @pl.when(k == 0)
    def _():
        y = jnp.dot(x_ref[...], wf_ref[...], preferred_element_type=jnp.float32)
        h_ref[...] = (jnp.maximum(y + auxf_ref[0:1, :], 0.0) * auxf_ref[1:2, :]
                      + auxf_ref[2:3, :]).astype(jnp.bfloat16)

    # Hidden layer k (streamed, auto-pipelined weight block).
    y = jnp.dot(h_ref[...], wh_ref[0], preferred_element_type=jnp.float32)
    aux = auxh_ref[0]
    h_ref[...] = (jnp.maximum(y + aux[0:1, :], 0.0) * aux[1:2, :]
                  + aux[2:3, :]).astype(jnp.bfloat16)

    # Final Linear after the last hidden layer.
    @pl.when(k == last)
    def _():
        o_ref[...] = (jnp.dot(h_ref[...], wl_ref[...],
                              preferred_element_type=jnp.float32)
                      + bl_ref[0:1, :])


# ---------------------------------------------------------------------------
# Wrapper
# ---------------------------------------------------------------------------
@functools.partial(jax.jit, static_argnums=(2, 3, 4))
def _forward_impl(x, arrays, n_hidden, output_dim, force_streamed):
    w_first, aux_first, w_hid, aux_hid, w_last, b_last = arrays
    batch, input_dim = x.shape
    din, dlat = w_first.shape
    dout = w_last.shape[1]
    nh_stack = w_hid.shape[0]            # = max(n_hidden, 1)

    bt = _choose_batch_tile(batch)
    b_pad = _round_up(batch, bt)
    n_bt = b_pad // bt

    x_pad = jnp.zeros((b_pad, din), jnp.bfloat16)
    x_pad = x_pad.at[:batch, :input_dim].set(x.astype(jnp.bfloat16))

    capacity = _vmem_capacity_bytes()
    budget = int(0.60 * capacity)
    est_resident = _resident_vmem_bytes(bt, din, dlat, dout, nh_stack)
    use_resident = (not force_streamed) and (est_resident <= budget)
    if n_hidden < 1:
        use_resident = True              # streamed path needs >= 1 hidden step

    if use_resident:
        est = est_resident
        vmem_limit = int(min(max(est + (8 << 20), 32 << 20), int(0.75 * capacity)))
        kernel = functools.partial(_mlp_resident_kernel, n_hidden=n_hidden)
        out = pl.pallas_call(
            kernel,
            out_shape=jax.ShapeDtypeStruct((b_pad, dout), jnp.float32),
            grid_spec=pltpu.PrefetchScalarGridSpec(
                num_scalar_prefetch=0,
                grid=(n_bt,),
                in_specs=[
                    pl.BlockSpec((bt, din), lambda bi: (bi, 0)),
                    pl.BlockSpec((din, dlat), lambda bi: (0, 0)),
                    pl.BlockSpec((8, dlat), lambda bi: (0, 0)),
                    pl.BlockSpec((nh_stack, dlat, dlat), lambda bi: (0, 0, 0)),
                    pl.BlockSpec((nh_stack, 8, dlat), lambda bi: (0, 0, 0)),
                    pl.BlockSpec((dlat, dout), lambda bi: (0, 0)),
                    pl.BlockSpec((8, dout), lambda bi: (0, 0)),
                ],
                out_specs=pl.BlockSpec((bt, dout), lambda bi: (bi, 0)),
                scratch_shapes=[pltpu.VMEM((bt, dlat), jnp.bfloat16)],
            ),
            compiler_params=pltpu.CompilerParams(
                dimension_semantics=("parallel",),
                vmem_limit_bytes=vmem_limit),
        )(x_pad, w_first, aux_first, w_hid, aux_hid, w_last, b_last)
    else:
        nbuf = 3 if n_hidden >= 4 else 2
        est = _streamed_vmem_bytes(bt, din, dlat, dout, nbuf)
        vmem_limit = int(min(max(est + (8 << 20), 32 << 20), int(0.75 * capacity)))
        if n_hidden >= 4:
            whid_spec = pl.BlockSpec((1, dlat, dlat), lambda bi, k: (k, 0, 0),
                                     pipeline_mode=pl.Buffered(3))
        else:
            whid_spec = pl.BlockSpec((1, dlat, dlat), lambda bi, k: (k, 0, 0))
        out = pl.pallas_call(
            _mlp_streamed_kernel,
            out_shape=jax.ShapeDtypeStruct((b_pad, dout), jnp.float32),
            grid_spec=pltpu.PrefetchScalarGridSpec(
                num_scalar_prefetch=0,
                grid=(n_bt, n_hidden),
                in_specs=[
                    pl.BlockSpec((bt, din), lambda bi, k: (bi, 0)),
                    pl.BlockSpec((din, dlat), lambda bi, k: (0, 0)),
                    pl.BlockSpec((8, dlat), lambda bi, k: (0, 0)),
                    whid_spec,
                    pl.BlockSpec((1, 8, dlat), lambda bi, k: (k, 0, 0)),
                    pl.BlockSpec((dlat, dout), lambda bi, k: (0, 0)),
                    pl.BlockSpec((8, dout), lambda bi, k: (0, 0)),
                ],
                out_specs=pl.BlockSpec((bt, dout), lambda bi, k: (bi, 0)),
                scratch_shapes=[pltpu.VMEM((bt, dlat), jnp.bfloat16)],
            ),
            compiler_params=pltpu.CompilerParams(
                dimension_semantics=("parallel", "arbitrary"),
                vmem_limit_bytes=vmem_limit),
        )(x_pad, w_first, aux_first, w_hid, aux_hid, w_last, b_last)

    return out[:batch, :output_dim]


def mlp_forward(x, arrays, n_hidden, output_dim, *, force_streamed=False):
    """Fused forward pass. Returns (batch, output_dim) f32 logits."""
    return _forward_impl(x, arrays, int(n_hidden), int(output_dim),
                         bool(force_streamed))


# ---------------------------------------------------------------------------
# Parameter construction (deterministic, synthetic) + packing
# ---------------------------------------------------------------------------
def init_params(key, input_dim, latent_dim, output_dim, n_layers):
    """Parameters mirroring MLPClassifier.__init__ shapes (eval-mode BN folded).

    Weights are stored as (in_features, out_features) so the kernel computes
    x @ W directly (PyTorch stores (out, in) and computes x @ W.T).
    """
    eps = 1e-5
    params = {"hidden": [], "final": None}
    dims_in = [input_dim] + [latent_dim] * (n_layers - 1)
    for d_in in dims_in:
        key, kw, kb, kg, kbe, km, kv = jax.random.split(key, 7)
        bound = 1.0 / jnp.sqrt(jnp.float32(d_in))
        w = jax.random.uniform(kw, (d_in, latent_dim), jnp.float32, -bound, bound)
        b = jax.random.uniform(kb, (1, latent_dim), jnp.float32, -bound, bound)
        gamma = 1.0 + 0.1 * jax.random.normal(kg, (1, latent_dim), jnp.float32)
        beta = 0.1 * jax.random.normal(kbe, (1, latent_dim), jnp.float32)
        running_mean = 0.1 * jax.random.normal(km, (1, latent_dim), jnp.float32)
        running_var = jnp.abs(
            1.0 + 0.1 * jax.random.normal(kv, (1, latent_dim), jnp.float32))
        scale = gamma / jnp.sqrt(running_var + eps)   # fold eval-mode BN
        shift = beta - running_mean * scale
        params["hidden"].append((w, b, scale, shift))

    key, kw, kb = jax.random.split(key, 3)
    bound = 1.0 / jnp.sqrt(jnp.float32(latent_dim))
    w_out = jax.random.uniform(kw, (latent_dim, output_dim), jnp.float32, -bound, bound)
    b_out = jax.random.uniform(kb, (1, output_dim), jnp.float32, -bound, bound)
    params["final"] = (w_out, b_out)
    return params


def pack_params(params):
    """Per-role zero-padding (multiples of 128 lanes) + bf16 weights.

    Returns (arrays, n_hidden, output_dim) where arrays =
      (w_first (Din,Dlat) bf16, aux_first (8,Dlat) f32,
       w_hid (nh,Dlat,Dlat) bf16, aux_hid (nh,8,Dlat) f32,
       w_last (Dlat,Dout) bf16, b_last (8,Dout) f32).
    Padded lanes carry bias = scale = shift = 0 so they stay exactly zero.
    """
    hidden = params["hidden"]
    w0, b0, s0, t0 = hidden[0]
    input_dim, latent_dim = w0.shape
    w_out, b_out = params["final"]
    output_dim = w_out.shape[1]

    din = _round_up(input_dim, 128)
    dlat = _round_up(latent_dim, 128)
    dout = _round_up(output_dim, 128)
    n_hidden = len(hidden) - 1
    nh_stack = max(n_hidden, 1)

    w_first = jnp.zeros((din, dlat), jnp.float32).at[:input_dim, :latent_dim].set(w0)
    aux_first = jnp.zeros((8, dlat), jnp.float32)
    aux_first = aux_first.at[0, :latent_dim].set(b0[0])
    aux_first = aux_first.at[1, :latent_dim].set(s0[0])
    aux_first = aux_first.at[2, :latent_dim].set(t0[0])

    w_hid = jnp.zeros((nh_stack, dlat, dlat), jnp.float32)
    aux_hid = jnp.zeros((nh_stack, 8, dlat), jnp.float32)
    for i, (w, b, s, t) in enumerate(hidden[1:]):
        w_hid = w_hid.at[i, :latent_dim, :latent_dim].set(w)
        aux_hid = aux_hid.at[i, 0, :latent_dim].set(b[0])
        aux_hid = aux_hid.at[i, 1, :latent_dim].set(s[0])
        aux_hid = aux_hid.at[i, 2, :latent_dim].set(t[0])

    w_last = jnp.zeros((dlat, dout), jnp.float32).at[:latent_dim, :output_dim].set(w_out)
    b_last = jnp.zeros((8, dout), jnp.float32).at[0, :output_dim].set(b_out[0])

    arrays = (w_first.astype(jnp.bfloat16), aux_first,
              w_hid.astype(jnp.bfloat16), aux_hid,
              w_last.astype(jnp.bfloat16), b_last)
    return arrays, n_hidden, output_dim


# ---------------------------------------------------------------------------
# Reference implementation (pure jnp, same bf16 rounding points)
# ---------------------------------------------------------------------------
def mlp_forward_ref(x, params):
    def bf(v):
        return v.astype(jnp.bfloat16).astype(jnp.float32)

    h = x
    for (w, b, scale, shift) in params["hidden"]:
        y = jnp.dot(bf(h), bf(w), preferred_element_type=jnp.float32) + b
        h = jnp.maximum(y, 0.0) * scale + shift
    w_out, b_out = params["final"]
    return jnp.dot(bf(h), bf(w_out), preferred_element_type=jnp.float32) + b_out


if __name__ == "__main__":
    key = jax.random.PRNGKey(0)
    dropout_rate = 0.5  # eval-mode dropout is the identity

    # Small shapes consistent with the module's forward (x is (batch, features)).
    configs = [
        dict(batch=8, input_dim=32, latent_dim=64, output_dim=8, n_layers=3),
        dict(batch=40, input_dim=24, latent_dim=48, output_dim=10, n_layers=2),
    ]

    for cfg in configs:
        key, kp, kx = jax.random.split(key, 3)
        x = jax.random.normal(kx, (cfg["batch"], cfg["input_dim"]), jnp.float32)
        params = init_params(kp, cfg["input_dim"], cfg["latent_dim"],
                             cfg["output_dim"], cfg["n_layers"])
        arrays, n_hidden, output_dim = pack_params(params)
        ref = mlp_forward_ref(x, params)

        # Primary path: VMEM-resident weights, in-kernel layer loop.
        out = jax.block_until_ready(mlp_forward(x, arrays, n_hidden, output_dim))
        assert out.shape == (cfg["batch"], cfg["output_dim"])
        assert jnp.allclose(out, ref, atol=2e-2, rtol=2e-2), "resident path mismatch"

        # Fallback path: streamed hidden weights (exercised for coverage).
        out_s = jax.block_until_ready(
            mlp_forward(x, arrays, n_hidden, output_dim, force_streamed=True))
        assert out_s.shape == (cfg["batch"], cfg["output_dim"])
        assert jnp.allclose(out_s, ref, atol=2e-2, rtol=2e-2), "streamed path mismatch"

    print("KERNEL_OK")
</pallas_src>

<mosaic_0001>
module attributes {stable_mosaic.version = 11 : i64} {
  func.func @_mlp_resident_kernel(%arg0: i32, %arg1: memref<16x128xbf16, #tpu.memory_space<vmem>>, %arg2: memref<128x128xbf16, #tpu.memory_space<vmem>>, %arg3: memref<8x128xf32, #tpu.memory_space<vmem>>, %arg4: memref<2x128x128xbf16, #tpu.memory_space<vmem>>, %arg5: memref<2x8x128xf32, #tpu.memory_space<vmem>>, %arg6: memref<128x128xbf16, #tpu.memory_space<vmem>>, %arg7: memref<8x128xf32, #tpu.memory_space<vmem>>, %arg8: memref<16x128xf32, #tpu.memory_space<vmem>>, %arg9: memref<16x128xbf16, #tpu.memory_space<vmem>>) attributes {dimension_semantics = [#tpu.dimension_semantics<parallel>], iteration_bounds = array<i64: 1>, scalar_prefetch = 0 : i64, scratch_operands = 1 : i64, tpu.core_type = #tpu.core_type<tc>, window_params = [{transform_indices = @transform_0, window_bounds = array<i64: 16, 128>}, {pipeline_mode = #tpu.pipeline_mode<synchronous>, transform_indices = @transform_1, window_bounds = array<i64: 128, 128>}, {pipeline_mode = #tpu.pipeline_mode<synchronous>, transform_indices = @transform_2, window_bounds = array<i64: 8, 128>}, {pipeline_mode = #tpu.pipeline_mode<synchronous>, transform_indices = @transform_3, window_bounds = array<i64: 2, 128, 128>}, {pipeline_mode = #tpu.pipeline_mode<synchronous>, transform_indices = @transform_4, window_bounds = array<i64: 2, 8, 128>}, {pipeline_mode = #tpu.pipeline_mode<synchronous>, transform_indices = @transform_5, window_bounds = array<i64: 128, 128>}, {pipeline_mode = #tpu.pipeline_mode<synchronous>, transform_indices = @transform_6, window_bounds = array<i64: 8, 128>}, {transform_indices = @transform_7, window_bounds = array<i64: 16, 128>}]} {
    %c0 = arith.constant 0 : index
    %c0_0 = arith.constant 0 : index
    %0 = vector.load %arg1[%c0, %c0_0] : memref<16x128xbf16, #tpu.memory_space<vmem>>, vector<16x128xbf16>
    %c0_1 = arith.constant 0 : index
    %c0_2 = arith.constant 0 : index
    %1 = vector.load %arg2[%c0_1, %c0_2] : memref<128x128xbf16, #tpu.memory_space<vmem>>, vector<128x128xbf16>
    %cst = arith.constant dense<0.000000e+00> : vector<16x128xf32>
    %2 = tpu.matmul %0, %1, %cst {dimension_numbers = #tpu.dot_dimension_numbers<[1], [0], [0], [1], [0, 0, 1, 1], [], []>} : vector<16x128xbf16>, vector<128x128xbf16>, vector<16x128xf32> -> vector<16x128xf32>
    %c0_3 = arith.constant 0 : index
    %c0_4 = arith.constant 0 : index
    %3 = vector.load %arg3[%c0_3, %c0_4] : memref<8x128xf32, #tpu.memory_space<vmem>>, vector<1x128xf32>
    %4 = vector.broadcast %3 : vector<1x128xf32> to vector<16x128xf32>
    %5 = arith.addf %2, %4 : vector<16x128xf32>
    %cst_5 = arith.constant 0.000000e+00 : f32
    %6 = vector.broadcast %cst_5 : f32 to vector<16x128xf32>
    %7 = arith.maximumf %5, %6 : vector<16x128xf32>
    %c1 = arith.constant 1 : index
    %c0_6 = arith.constant 0 : index
    %8 = vector.load %arg3[%c1, %c0_6] : memref<8x128xf32, #tpu.memory_space<vmem>>, vector<1x128xf32>
    %9 = vector.broadcast %8 : vector<1x128xf32> to vector<16x128xf32>
    %10 = arith.mulf %7, %9 : vector<16x128xf32>
    %c2 = arith.constant 2 : index
    %c0_7 = arith.constant 0 : index
    %11 = vector.load %arg3[%c2, %c0_7] : memref<8x128xf32, #tpu.memory_space<vmem>>, vector<1x128xf32>
    %12 = vector.broadcast %11 : vector<1x128xf32> to vector<16x128xf32>
    %13 = arith.addf %10, %12 : vector<16x128xf32>
    %14 = arith.truncf %13 : vector<16x128xf32> to vector<16x128xbf16>
    %c0_8 = arith.constant 0 : index
    %c0_9 = arith.constant 0 : index
    %15 = vector.load %arg9[%c0_8, %c0_9] : memref<16x128xbf16, #tpu.memory_space<vmem>>, vector<16x128xbf16>
    tpu.vector_store %arg9[%c0_8, %c0_9], %14 {strides = array<i32>} : memref<16x128xbf16, #tpu.memory_space<vmem>>, vector<16x128xbf16>,
    %c0_i32 = arith.constant 0 : i32
    %c2_i32 = arith.constant 2 : i32
    %16 = arith.addi %c0_i32, %c2_i32 : i32
    %c1_i32 = arith.constant 1 : i32
    scf.for %arg10 = %c0_i32 to %16 step %c1_i32  : i32 {
      %c0_20 = arith.constant 0 : index
      %c0_21 = arith.constant 0 : index
      %24 = vector.load %arg9[%c0_20, %c0_21] : memref<16x128xbf16, #tpu.memory_space<vmem>>, vector<16x128xbf16>
      %25 = arith.index_cast %arg10 : i32 to index
      %c0_22 = arith.constant 0 : index
      %c0_23 = arith.constant 0 : index
      %26 = vector.load %arg4[%25, %c0_22, %c0_23] : memref<2x128x128xbf16, #tpu.memory_space<vmem>>, vector<1x128x128xbf16>
      %27 = vector.shape_cast %26 : vector<1x128x128xbf16> to vector<128x128xbf16>
      %cst_24 = arith.constant dense<0.000000e+00> : vector<16x128xf32>
      %28 = tpu.matmul %24, %27, %cst_24 {dimension_numbers = #tpu.dot_dimension_numbers<[1], [0], [0], [1], [0, 0, 1, 1], [], []>} : vector<16x128xbf16>, vector<128x128xbf16>, vector<16x128xf32> -> vector<16x128xf32>
      %29 = arith.index_cast %arg10 : i32 to index
      %c0_25 = arith.constant 0 : index
      %c0_26 = arith.constant 0 : index
      %30 = vector.load %arg5[%29, %c0_25, %c0_26] : memref<2x8x128xf32, #tpu.memory_space<vmem>>, vector<1x8x128xf32>
      %31 = vector.shape_cast %30 : vector<1x8x128xf32> to vector<8x128xf32>
      %32 = vector.extract_strided_slice %31 {offsets = [0, 0], sizes = [1, 128], strides = [1, 1]} : vector<8x128xf32> to vector<1x128xf32>
      %33 = vector.broadcast %32 : vector<1x128xf32> to vector<16x128xf32>
      %34 = arith.addf %28, %33 : vector<16x128xf32>
      %cst_27 = arith.constant 0.000000e+00 : f32
      %35 = vector.broadcast %cst_27 : f32 to vector<16x128xf32>
      %36 = arith.maximumf %34, %35 : vector<16x128xf32>
      %37 = vector.extract_strided_slice %31 {offsets = [1, 0], sizes = [1, 128], strides = [1, 1]} : vector<8x128xf32> to vector<1x128xf32>
      %38 = vector.broadcast %37 : vector<1x128xf32> to vector<16x128xf32>
      %39 = arith.mulf %36, %38 : vector<16x128xf32>
      %40 = vector.extract_strided_slice %31 {offsets = [2, 0], sizes = [1, 128], strides = [1, 1]} : vector<8x128xf32> to vector<1x128xf32>
      %41 = vector.broadcast %40 : vector<1x128xf32> to vector<16x128xf32>
      %42 = arith.addf %39, %41 : vector<16x128xf32>
      %43 = arith.truncf %42 : vector<16x128xf32> to vector<16x128xbf16>
      %c0_28 = arith.constant 0 : index
      %c0_29 = arith.constant 0 : index
      %44 = vector.load %arg9[%c0_28, %c0_29] : memref<16x128xbf16, #tpu.memory_space<vmem>>, vector<16x128xbf16>
      tpu.vector_store %arg9[%c0_28, %c0_29], %43 {strides = array<i32>} : memref<16x128xbf16, #tpu.memory_space<vmem>>, vector<16x128xbf16>,
    }
    %c2_i32_10 = arith.constant 2 : i32
    %c0_11 = arith.constant 0 : index
    %c0_12 = arith.constant 0 : index
    %17 = vector.load %arg9[%c0_11, %c0_12] : memref<16x128xbf16, #tpu.memory_space<vmem>>, vector<16x128xbf16>
    %c0_13 = arith.constant 0 : index
    %c0_14 = arith.constant 0 : index
    %18 = vector.load %arg6[%c0_13, %c0_14] : memref<128x128xbf16, #tpu.memory_space<vmem>>, vector<128x128xbf16>
    %cst_15 = arith.constant dense<0.000000e+00> : vector<16x128xf32>
    %19 = tpu.matmul %17, %18, %cst_15 {dimension_numbers = #tpu.dot_dimension_numbers<[1], [0], [0], [1], [0, 0, 1, 1], [], []>} : vector<16x128xbf16>, vector<128x128xbf16>, vector<16x128xf32> -> vector<16x128xf32>
    %c0_16 = arith.constant 0 : index
    %c0_17 = arith.constant 0 : index
    %20 = vector.load %arg7[%c0_16, %c0_17] : memref<8x128xf32, #tpu.memory_space<vmem>>, vector<1x128xf32>
    %21 = vector.broadcast %20 : vector<1x128xf32> to vector<16x128xf32>
    %22 = arith.addf %19, %21 : vector<16x128xf32>
    %c0_18 = arith.constant 0 : index
    %c0_19 = arith.constant 0 : index
    %23 = vector.load %arg8[%c0_18, %c0_19] : memref<16x128xf32, #tpu.memory_space<vmem>>, vector<16x128xf32>
    tpu.vector_store %arg8[%c0_18, %c0_19], %22 {strides = array<i32>} : memref<16x128xf32, #tpu.memory_space<vmem>>, vector<16x128xf32>,
    return
  }
  func.func @transform_0(%arg0: i32) -> (i32, i32) {
    %c0_i32 = arith.constant 0 : i32
    %c0_i32_0 = arith.constant 0 : i32
    return %arg0, %c0_i32 : i32, i32
  }
  func.func @transform_1(%arg0: i32) -> (i32, i32) {
    %c0_i32 = arith.constant 0 : i32
    %c0_i32_0 = arith.constant 0 : i32
    %c0_i32_1 = arith.constant 0 : i32
    return %c0_i32, %c0_i32_0 : i32, i32
  }
  func.func @transform_2(%arg0: i32) -> (i32, i32) {
    %c0_i32 = arith.constant 0 : i32
    %c0_i32_0 = arith.constant 0 : i32
    %c0_i32_1 = arith.constant 0 : i32
    return %c0_i32, %c0_i32_0 : i32, i32
  }
  func.func @transform_3(%arg0: i32) -> (i32, i32, i32) {
    %c0_i32 = arith.constant 0 : i32
    %c0_i32_0 = arith.constant 0 : i32
    %c0_i32_1 = arith.constant 0 : i32
    %c0_i32_2 = arith.constant 0 : i32
    return %c0_i32, %c0_i32_0, %c0_i32_1 : i32, i32, i32
  }
  func.func @transform_4(%arg0: i32) -> (i32, i32, i32) {
    %c0_i32 = arith.constant 0 : i32
    %c0_i32_0 = arith.constant 0 : i32
    %c0_i32_1 = arith.constant 0 : i32
    %c0_i32_2 = arith.constant 0 : i32
    return %c0_i32, %c0_i32_0, %c0_i32_1 : i32, i32, i32
  }
  func.func @transform_5(%arg0: i32) -> (i32, i32) {
    %c0_i32 = arith.constant 0 : i32
    %c0_i32_0 = arith.constant 0 : i32
    %c0_i32_1 = arith.constant 0 : i32
    return %c0_i32, %c0_i32_0 : i32, i32
  }
  func.func @transform_6(%arg0: i32) -> (i32, i32) {
    %c0_i32 = arith.constant 0 : i32
    %c0_i32_0 = arith.constant 0 : i32
    %c0_i32_1 = arith.constant 0 : i32
    return %c0_i32, %c0_i32_0 : i32, i32
  }
  func.func @transform_7(%arg0: i32) -> (i32, i32) {
    %c0_i32 = arith.constant 0 : i32
    %c0_i32_0 = arith.constant 0 : i32
    return %arg0, %c0_i32 : i32, i32
  }
}

</mosaic_0001>

<bundles_post_ra>
// kernel: _forward_impl.1
= control target key start
LH: loop header
LB: loop body
LE: loop exit
PB: predicated region body
PF: predicated region fallthrough
CT: control target
= control target key end

     0   :  { %12 = vsyncpa [#allocation4], 0  ;;  %s868_s0 = inlined_call_operand.vmem [shape: bf16[16,128], index: 0, kind: input, shape index: {}]   ;;  %s869_s1 = inlined_call_operand.hbm [shape: bf16[128,128], index: 1, kind: input, shape index: {}]   ;;  %s870_s2 = inlined_call_operand.vmem [shape: f32[8,128], index: 2, kind: input, shape index: {}]   ;;  %s871_s3 = inlined_call_operand.hbm [shape: bf16[2,128,128], index: 3, kind: input, shape index: {}]   ;;  %s872_s4 = inlined_call_operand.vmem [shape: f32[2,8,128], index: 4, kind: input, shape index: {}]   ;;  %s873_s5 = inlined_call_operand.hbm [shape: bf16[128,128], index: 5, kind: input, shape index: {}]   ;;  %s874_s6 = inlined_call_operand.vmem [shape: f32[8,128], index: 6, kind: input, shape index: {}]   ;;  %s875_s7 = inlined_call_operand.vmem [shape: f32[16,128], index: 7, kind: output, shape index: {}]  }
   0x1   :  { %13 = vsyncpa [#allocation6], 0  ;;  %s756_s24 = smov [#allocation5]   ;;  %s757_s26 = smov [#allocation3]  }
   0x2   :  { %s35_s25 = sshll.u32 %s756_s24, 4  ;;  %s21_s27 = sshll.u32 %s757_s26, 4  ;;  %s36_s25 = int_to_ptr.vmem [resolvable:$true] %s35_s25  ;;  %s22_s27 = int_to_ptr.vmem [resolvable:$true] %s21_s27 }
   0x3   :  { %s692_s28 = scalar_lea.vmem %s36_s25, 2048  ;;  %p697_p1 = scmp.lt.s32.totalorder %s36_s25, %s36_s25 }
   0x4   :  { %p693_p0 = scmp.ne.s32.totalorder %s36_s25, %s692_s28  ;;  %p698_p2 = scmp.lt.s32.totalorder %s692_s28, %s692_s28 }
   0x6   :  { %p699_p3 = por %p698_p2, %p697_p1 }
   0x8   :  { %p700_p4 = pnand %p699_p3, %p693_p0 }
   0xa   :  { %703 = shalt.err (!%p700_p4)
}
   0xb   :  { %s758_s29 = smov 64   ;;  %s759_s30 = smov 4  }
   0xc   :  { %41 = dma.hbm_to_vmem [thread:$0]  %s871_s3, 2048, %s36_s25, [#allocation6], %s758_s29, %s758_s29, %s759_s30  }
   0xd   :  { %s712_s10 = scalar_lea.vmem %s22_s27, 1024  ;;  %p717_p6 = scmp.lt.s32.totalorder %s22_s27, %s22_s27 }
   0xe   :  { %p713_p5 = scmp.ne.s32.totalorder %s22_s27, %s712_s10  ;;  %p718_p7 = scmp.lt.s32.totalorder %s712_s10, %s712_s10 }
  0x10   :  { %p719_p8 = por %p718_p7, %p717_p6 }
  0x12   :  { %p720_p9 = pnand %p719_p8, %p713_p5 }
  0x14   :  { %723 = shalt.err (!%p720_p9)
}
  0x15   :  { %27 = dma.hbm_to_vmem [thread:$0]  %s869_s1, 1024, %s22_s27, [#allocation4], %s758_s29, %s758_s29, %s759_s30  }
  0x16   :  { %s760_s13 = smov [#allocation7]  }
  0x17   :  { %s49_s14 = sshll.u32 %s760_s13, 4  ;;  %s50_s14 = int_to_ptr.vmem [resolvable:$true] %s49_s14 }
  0x18   :  { %s732_s15 = scalar_lea.vmem %s50_s14, 1024  ;;  %p737_p11 = scmp.lt.s32.totalorder %s50_s14, %s50_s14 }
  0x19   :  { %p733_p10 = scmp.ne.s32.totalorder %s50_s14, %s732_s15  ;;  %p738_p12 = scmp.lt.s32.totalorder %s732_s15, %s732_s15 }
  0x1b   :  { %p739_p13 = por %p738_p12, %p737_p11 }
  0x1d   :  { %p740_p0 = pnand %p739_p13, %p733_p10 }
  0x1f   :  { %743 = shalt.err (!%p740_p0)
}
  0x20   :  { %55 = dma.hbm_to_vmem [thread:$0]  %s873_s5, 1024, %s50_s14, [#allocation6], %s758_s29, %s758_s29, %s759_s30  }
  0x21   :  { %748 = dma.done.wait [#allocation4], 1024  }
  0x22   :  { %749 = vsyncadd [#allocation4], 4294966272 }
  0x23   :  { %750 = dma.done.wait [#allocation6], 3072  }
  0x24   :  { %751 = vsyncadd [#allocation6], 4294964224  ;;  %v761_v0 = vmov 0.0   ;;  %vm762_vm0 = vmmov 0   ;;  %v657_v1 = vld [vmem:[#allocation3 + $0x38] sm:$0xff]   ;;  %v658_v2 = vld [vmem:[#allocation3 + $0x30] sm:$0xff]  }
  0x25   :  { %580 = vmatprep.subr.bf16.mxu0 %v761_v0  ;;  %596 = vmatprep.mubr.msk.bf16.mxu0 %vm762_vm0, %v761_v0  ;;  %v659_v3 = vld [vmem:[#allocation3 + $0x28] sm:$0xff]   ;;  %v660_v4 = vld [vmem:[#allocation3 + $0x20] sm:$0xff]   ;;  %v661_v5 = vld [vmem:[#allocation3 + $0x18] sm:$0xff]   ;;  %s836_s22 = smov 0  }
  0x26   :  { %581 = vmatpush3.bf16.msra.mxu0 %v657_v1  ;;  %v662_v6 = vld [vmem:[#allocation3 + $0x10] sm:$0xff]   ;;  %v663_v7 = vld [vmem:[#allocation3 + $0x8] sm:$0xff]   ;;  %v664_v8 = vld [vmem:[#allocation3] sm:$0xff]  }
  0x27   :  { %582 = vmatprep.subr.bf16.mxu0 %v761_v0  ;;  %v665_v9 = vld [vmem:[%s868_s0] sm:$0xff]  }
  0x28   :  { %v500_v10 = vld [vmem:[%s870_s2] ss:$0 sm:$0xff]  ;;  %v510_v15 = vld [vmem:[%s870_s2 + $0x1] ss:$0 sm:$0xff]  ;;  %v511_v21 = vld [vmem:[%s870_s2 + $0x2] ss:$0 sm:$0xff] }
  0x2a   :  { %583 = vmatpush3.bf16.msra.mxu0 %v658_v2 }
  0x2b   :  { %584 = vmatprep.subr.bf16.mxu0 %v761_v0 }
  0x2e   :  { %585 = vmatpush3.bf16.msra.mxu0 %v659_v3 }
  0x2f   :  { %586 = vmatprep.subr.bf16.mxu0 %v761_v0 }
  0x32   :  { %587 = vmatpush3.bf16.msra.mxu0 %v660_v4 }
  0x33   :  { %588 = vmatprep.subr.bf16.mxu0 %v761_v0 }
  0x36   :  { %589 = vmatpush3.bf16.msra.mxu0 %v661_v5 }
  0x37   :  { %590 = vmatprep.subr.bf16.mxu0 %v761_v0 }
  0x3a   :  { %591 = vmatpush3.bf16.msra.mxu0 %v662_v6 }
  0x3b   :  { %592 = vmatprep.subr.bf16.mxu0 %v761_v0 }
  0x3e   :  { %593 = vmatpush3.bf16.msra.mxu0 %v663_v7 }
  0x3f   :  { %594 = vmatprep.subr.bf16.mxu0 %v761_v0 }
  0x42   :  { %595 = vmatpush3.bf16.msra.mxu0 %v664_v8 }
  0x45   :  { %597 = vmatmul.mubr.bf16.vlgmr.msra.gmra.mxu0 %v665_v9 }
 0x105   :  { %v179_v11 = vpop.f32.mrf.mxu0 }
 0x106   :  { %v180_v12 = vadd.f32 %v500_v10, %v179_v11 }
 0x107   :  { %v598_v13 = vpop.f32.mrf.mxu0 }
 0x108   :  { %v186_v14 = vmax.f32 %v180_v12, 0.0 }
 0x109   :  { %v182_v16 = vpop.f32.mrf.mxu0 }
 0x10a   :  { %v183_v17 = vadd.f32 %v500_v10, %v182_v16  ;;  %v193_v19 = vmul.f32 %v510_v15, %v186_v14 }
 0x10b   :  { %v599_v18 = vpop.f32.mrf.mxu0 }
 0x10c   :  { %v187_v20 = vmax.f32 %v183_v17, 0.0  ;;  %v200_v23 = vadd.f32 %v511_v21, %v193_v19 }
 0x10e   :  { %v194_v22 = vmul.f32 %v510_v15, %v187_v20 }
 0x110   :  { %v201_v24 = vadd.f32 %v511_v21, %v194_v22 }
 0x112   :  { %v546_v25 = vpack.c.bf16 %v201_v24, %v200_v23 }
 0x114   :  { %547 = vst [vmem:[#allocation2] sm:$0xff] %v546_v25  }
 0x115 LB: > { %v763_v26 = vmov 0.0   ;;  %vm764_vm1 = vmmov 0   ;;  %s540_s23 = sshll.u32 %s754_s22, 6  ;;  %v242_v36 = vlaneseq  ;;  %s516_s2 = sshll.u32 %s754_s22, 3  ;;  %s754_s22 = sphi %s836_s22, %s217_s22  }
 0x116   : > { %600 = vmatprep.subr.bf16.mxu0 %v763_v26  ;;  %616 = vmatprep.mubr.msk.bf16.mxu0 %vm764_vm1, %v763_v26  ;;  %s222_s24 = scalar_lea.vmem [#allocation5], %s540_s23  ;;  %s240_s27 = scalar_lea.vmem %s872_s4, %s516_s2 }
 0x117   : > { %v666_v27 = vld [vmem:[%s222_s24 + $0x38] sm:$0xff]   ;;  %v667_v28 = vld [vmem:[%s222_s24 + $0x30] sm:$0xff]   ;;  %v668_v29 = vld [vmem:[%s222_s24 + $0x28] sm:$0xff]   ;;  %v243_v37 = vshrl.u32 %v242_v36, 7  ;;  %s217_s22 = sadd.s32 1, %s754_s22  }
 0x118   : > { %601 = vmatpush3.bf16.msra.mxu0 %v666_v27  ;;  %v669_v30 = vld [vmem:[%s222_s24 + $0x20] sm:$0xff]   ;;  %v670_v31 = vld [vmem:[%s222_s24 + $0x18] sm:$0xff]   ;;  %v671_v32 = vld [vmem:[%s222_s24 + $0x10] sm:$0xff]   ;;  %p214_p1 = scmp.ge.s32.totalorder %s217_s22, 2  }
 0x119   : > { %602 = vmatprep.subr.bf16.mxu0 %v763_v26  ;;  %v672_v33 = vld [vmem:[%s222_s24 + $0x8] sm:$0xff]   ;;  %v673_v34 = vld [vmem:[%s222_s24] sm:$0xff]   ;;  %v244_v38 = vsub.s32 0, %v243_v37  ;;  %v345_v41 = vsub.s32 1, %v243_v37  ;;  %v351_v47 = vsub.s32 2, %v243_v37  ;;  %v675_v58 = vld [vmem:[#allocation7 + $0x38] sm:$0xff] (%p214_p1)  }
 0x11a   : > { %v241_v39 = vld [vmem:[%s240_s27] sm:$0xff]  ;;  %v676_v59 = vld [vmem:[#allocation7 + $0x30] sm:$0xff] (%p214_p1)   ;;  %v678_v61 = vld [vmem:[#allocation7 + $0x20] sm:$0xff] (%p214_p1)  }
 0x11b   : > { %v674_v35 = vld [vmem:[#allocation2] sm:$0xff]   ;;  %v245_v40 = vrot.slane %v241_v39, %v244_v38  ;;  %v346_v46 = vrot.slane %v241_v39, %v345_v41  ;;  %v352_v52 = vrot.slane %v241_v39, %v351_v47  ;;  %v677_v60 = vld [vmem:[#allocation7 + $0x28] sm:$0xff] (%p214_p1)   ;;  %v680_v63 = vld [vmem:[#allocation7 + $0x10] sm:$0xff] (%p214_p1)  }
 0x11c   : > { %603 = vmatpush3.bf16.msra.mxu0 %v667_v28  ;;  %v679_v62 = vld [vmem:[#allocation7 + $0x18] sm:$0xff] (%p214_p1)   ;;  %v681_v1 = vld [vmem:[#allocation7 + $0x8] sm:$0xff] (%p214_p1)   ;;  %v682_v2 = vld [vmem:[#allocation7] sm:$0xff] (%p214_p1)  }
 0x11d   : > { %604 = vmatprep.subr.bf16.mxu0 %v763_v26  ;;  %v528_v4 = vld [vmem:[%s874_s6] ss:$0 sm:$0xff] (%p214_p1) }
 0x120   : > { %605 = vmatpush3.bf16.msra.mxu0 %v668_v29 }
 0x121   : > { %606 = vmatprep.subr.bf16.mxu0 %v763_v26 }
 0x124   : > { %607 = vmatpush3.bf16.msra.mxu0 %v669_v30 }
 0x125   : > { %608 = vmatprep.subr.bf16.mxu0 %v763_v26 }
 0x128   : > { %609 = vmatpush3.bf16.msra.mxu0 %v670_v31 }
 0x129   : > { %610 = vmatprep.subr.bf16.mxu0 %v763_v26 }
 0x12c   : > { %611 = vmatpush3.bf16.msra.mxu0 %v671_v32 }
 0x12d   : > { %612 = vmatprep.subr.bf16.mxu0 %v763_v26 }
 0x130   : > { %613 = vmatpush3.bf16.msra.mxu0 %v672_v33 }
 0x131   : > { %614 = vmatprep.subr.bf16.mxu0 %v763_v26 }
 0x134   : > { %615 = vmatpush3.bf16.msra.mxu0 %v673_v34 }
 0x135   :  { %620 = vmatprep.subr.bf16.mxu0 (%p214_p1), %v761_v0 }
 0x137   : > { %617 = vmatmul.mubr.bf16.vlgmr.msra.gmra.mxu0 %v674_v35 }
 0x138   :  { %636 = vmatprep.mubr.msk.bf16.mxu0 (%p214_p1), %vm762_vm0, %v761_v0  ;;  %621 = vmatpush3.bf16.msra.mxu0 (%p214_p1), %v675_v58 }
 0x139   :  { %622 = vmatprep.subr.bf16.mxu0 (%p214_p1), %v761_v0 }
 0x13c   :  { %623 = vmatpush3.bf16.msra.mxu0 (%p214_p1), %v676_v59 }
 0x13d   :  { %624 = vmatprep.subr.bf16.mxu0 (%p214_p1), %v761_v0 }
 0x140   :  { %625 = vmatpush3.bf16.msra.mxu0 (%p214_p1), %v677_v60 }
 0x141   :  { %626 = vmatprep.subr.bf16.mxu0 (%p214_p1), %v761_v0 }
 0x144   :  { %627 = vmatpush3.bf16.msra.mxu0 (%p214_p1), %v678_v61 }
 0x145   :  { %628 = vmatprep.subr.bf16.mxu0 (%p214_p1), %v761_v0 }
 0x148   :  { %629 = vmatpush3.bf16.msra.mxu0 (%p214_p1), %v679_v62 }
 0x149   :  { %630 = vmatprep.subr.bf16.mxu0 (%p214_p1), %v761_v0 }
 0x14c   :  { %631 = vmatpush3.bf16.msra.mxu0 (%p214_p1), %v680_v63 }
 0x14d   :  { %632 = vmatprep.subr.bf16.mxu0 (%p214_p1), %v761_v0 }
 0x150   :  { %633 = vmatpush3.bf16.msra.mxu0 (%p214_p1), %v681_v1 }
 0x151   :  { %634 = vmatprep.subr.bf16.mxu0 (%p214_p1), %v761_v0 }
 0x154   :  { %635 = vmatpush3.bf16.msra.mxu0 (%p214_p1), %v682_v2 }
 0x1f7   : > { %v334_v42 = vpop.f32.mrf.mxu0 }
 0x1f8   : > { %v335_v43 = vadd.f32 %v334_v42, %v245_v40 }
 0x1f9   : > { %v618_v44 = vpop.f32.mrf.mxu0 }
 0x1fa   : > { %v341_v45 = vmax.f32 %v335_v43, 0.0 }
 0x1fb   : > { %v337_v48 = vpop.f32.mrf.mxu0 }
 0x1fc   : > { %v338_v49 = vadd.f32 %v337_v48, %v245_v40  ;;  %v347_v51 = vmul.f32 %v346_v46, %v341_v45 }
 0x1fd   : > { %v619_v50 = vpop.f32.mrf.mxu0 }
 0x1fe   : > { %v342_v53 = vmax.f32 %v338_v49, 0.0  ;;  %v353_v55 = vadd.f32 %v352_v52, %v347_v51 }
 0x200   : > { %v348_v54 = vmul.f32 %v346_v46, %v342_v53 }
 0x202   : > { %v354_v56 = vadd.f32 %v352_v52, %v348_v54  ;;  %216 = sbr.rel (!%p214_p1) target bundleno = 277 (0x115), region = 69 }
 0x204   : > { %v551_v57 = vpack.c.bf16 %v354_v56, %v353_v55 }
 0x206   : > { %552 = vst [vmem:[#allocation2] sm:$0xff] %v551_v57  }
 0x20d   :  { %v683_v3 = vld [vmem:[#allocation2] sm:$0xff]  }
 0x20e   :  { %637 = vmatmul.mubr.bf16.vlgmr.msra.gmra.mxu0 %v683_v3 }
 0x2ce   :  { %v476_v5 = vpop.f32.mrf.mxu0 }
 0x2cf   :  { %v477_v6 = vadd.f32 %v528_v4, %v476_v5 }
 0x2d0   :  { %v638_v7 = vpop.f32.mrf.mxu0 }
 0x2d1   :  { %483 = vst [vmem:[%s875_s7] sm:$0xff] %v477_v6 }
 0x2d2   :  { %v479_v8 = vpop.f32.mrf.mxu0 }
 0x2d3   :  { %v480_v9 = vadd.f32 %v528_v4, %v479_v8 }
 0x2d4   :  { %v639_v10 = vpop.f32.mrf.mxu0 }
 0x2d5   :  { %484 = vst [vmem:[%s875_s7 + $0x8] sm:$0xff] %v480_v9 }
 0x2d6   :  { %489 = vsyncpa [#allocation4], 1 }
 0x2d7   :  { %490 = vsyncpa [#allocation6], 1 }

</bundles_post_ra>
